<compile_context>
chip_gen: v7x
topology: tpu7x:2x2x1
jax: 0.10.0
libtpu: 0.0.40
codegen_flags: <defaults>
</compile_context>

<pallas_src>
import functools

import jax
import jax.numpy as jnp
import numpy as np
from jax.experimental import pallas as pl
from jax.experimental.pallas import tpu as pltpu


def decoder_attn_kernel(
    x_ref,       # (T*B, F)   time-major flattened decoder inputs
    keys_ref,    # (B, L, H)  encoder hiddens (keys == values)
    gih_ref,     # (F, 3H)    fused, pre-transposed input->hidden gate weights [r|z|n]
    ghh_ref,     # (H, 3H)    fused, pre-transposed hidden->hidden gate weights [r|z|n]
    bias_ref,    # (3, 3H)    row0: gi bias, row1: gh bias, row2: [bq*1/sqrt(H) | bk | 0]
    wqk_ref,     # (H, 2H)    [wq*1/sqrt(H) | wk], pre-transposed
    reg_ref,     # (2H+1, Fp) rows 0:H = wrc, H:2H = wrq, row 2H = br (lane-padded)
    out_ref,     # (B, Fp)
    *,
    mxu_dtype,
):
    B, L, H = keys_ref.shape
    TB, _ = x_ref.shape
    T = TB // B

    # ---- packed biases (single tiny load, sliced as values) ----
    bias = bias_ref[...].astype(jnp.float32)                     # (3, 3H)
    b_gi = bias[0:1, :]                                          # (1, 3H)
    b_gh = jnp.broadcast_to(bias[1:2, :], (B, 3 * H))            # hoisted broadcast
    bq = bias[2:3, 0:H]                                          # (1, H), scale folded
    bk = bias[2:3, H:2 * H]                                      # (1, H)

    # ---- init_hidden: last encoder hidden state (small subview; keys not yet
    #      loaded as a full live value) ----
    h = keys_ref[:, pl.ds(L - 1, 1), :][:, 0, :].astype(jnp.float32)   # (B, H)

    # ---- GRU: fused input projection hoisted out of the recurrence ----
    x = x_ref[...].astype(mxu_dtype)                             # (T*B, F)
    gih = gih_ref[...].astype(mxu_dtype)                         # (F, 3H)
    gi = jnp.dot(x, gih, preferred_element_type=jnp.float32) + b_gi    # (T*B, 3H)

    ghh = ghh_ref[...].astype(mxu_dtype)                         # (H, 3H)

    # TODO(synk): for large T stage gi in VMEM scratch + lax.fori_loop(unroll=True).
    for t in range(T):                                           # T static & small
        gi_t = gi[t * B:(t + 1) * B, :]                          # (B, 3H) static slice
        gh = jnp.dot(h.astype(mxu_dtype), ghh,
                     preferred_element_type=jnp.float32) + b_gh  # one MXU push / step
        r = jax.nn.sigmoid(gi_t[:, 0:H] + gh[:, 0:H])
        z = jax.nn.sigmoid(gi_t[:, H:2 * H] + gh[:, H:2 * H])
        n = jnp.tanh(gi_t[:, 2 * H:3 * H] + r * gh[:, 2 * H:3 * H])
        h = (1.0 - z) * n + z * h                                # (B, H)

    query = h                                                    # last GRU output

    # ---- Attention (proj_values=False -> values == keys) ----
    wqk = wqk_ref[...].astype(mxu_dtype)                         # (H, 2H)
    proj_q = jnp.dot(query.astype(mxu_dtype), wqk[:, 0:H],
                     preferred_element_type=jnp.float32) + bq    # (B, H)

    keys3 = keys_ref[...].astype(jnp.float32)                    # (B, L, H) loaded post-GRU
    keys_flat = keys3.reshape(B * L, H)                          # flat for one MXU push
    proj_k = (jnp.dot(keys_flat.astype(mxu_dtype), wqk[:, H:2 * H],
                      preferred_element_type=jnp.float32)
              + bk).reshape(B, L, H)                             # (B, L, H)

    # scores / context as elementwise-mul + reduce (VPU/XLU), not M=1 matvecs.
    scores = jnp.sum(proj_q[:, None, :] * proj_k, axis=-1)       # (B, L)

    m = jnp.max(scores, axis=-1, keepdims=True)
    e = jnp.exp(scores - m)
    denom = jnp.sum(e, axis=-1, keepdims=True)
    alphas = e / denom                                           # exact (only B denoms)

    context = jnp.sum(alphas[:, :, None] * keys3, axis=1)        # (B, H)

    # ---- regression head: split-weight form of concat([context, query]) @ Wr.T ----
    wrc = reg_ref[0:H, :].astype(mxu_dtype)                      # (H, Fp) sublane-aligned
    wrq = reg_ref[H:2 * H, :].astype(mxu_dtype)                  # (H, Fp)
    br = reg_ref[pl.ds(2 * H, 1), :].astype(jnp.float32)         # (1, Fp)
    out = (jnp.dot(context.astype(mxu_dtype), wrc, preferred_element_type=jnp.float32)
           + jnp.dot(query.astype(mxu_dtype), wrq, preferred_element_type=jnp.float32)
           + br)                                                 # (B, Fp) lane-dense
    out_ref[...] = out.astype(out_ref.dtype)


def decoder_attn_forward(X, hidden_seq, params, *, mxu_dtype=jnp.float32):
    """Mirrors DecoderAttn.init_hidden(hidden_seq) followed by forward(X, mask=None).

    mxu_dtype: operand dtype fed to the MXU (accumulation is always f32).
               Use jnp.bfloat16 for production shapes on v6e/v7x; f32 keeps the
               tiny test bit-tight and is fine since these shapes are latency-bound.
    """
    B, T, F = X.shape
    _, L, H = hidden_seq.shape
    Fp = ((F + 127) // 128) * 128             # lane-dense output width

    inv_sqrt_h = np.float32(1.0 / np.sqrt(np.float32(H)))

    # --- host-side parameter packing (free at param-prep time) ---
    w_ih, w_hh = params['w_ih'], params['w_hh']           # (3H, F), (3H, H) [r,z,n]
    b_ih, b_hh = params['b_ih'], params['b_hh']           # (3H,)

    gates_ih = jnp.asarray(w_ih.T, jnp.float32)           # (F, 3H) [r|z|n] columns
    gates_hh = jnp.asarray(w_hh.T, jnp.float32)           # (H, 3H)

    # gi bias carries b_ih(+b_hh for r,z); gh bias carries b_hn only (multiplied by r).
    b_gi = jnp.concatenate([b_ih[0:H] + b_hh[0:H],
                            b_ih[H:2 * H] + b_hh[H:2 * H],
                            b_ih[2 * H:3 * H]])            # (3H,)
    b_gh = jnp.concatenate([jnp.zeros((2 * H,), jnp.float32),
                            b_hh[2 * H:3 * H]])            # (3H,)
    bqk = jnp.concatenate([params['bq'] * inv_sqrt_h,
                           params['bk'],
                           jnp.zeros((H,), jnp.float32)])  # (3H,)
    bias_blk = jnp.stack([b_gi, b_gh, bqk]).astype(jnp.float32)   # (3, 3H)

    wqk = jnp.concatenate([params['wq'].T * inv_sqrt_h,
                           params['wk'].T], axis=1).astype(jnp.float32)   # (H, 2H)

    wr = params['wr']                                      # (F, 2H)
    reg_slab = jnp.zeros((2 * H + 1, Fp), jnp.float32)
    reg_slab = reg_slab.at[0:H, :F].set(wr[:, :H].T)       # wrc
    reg_slab = reg_slab.at[H:2 * H, :F].set(wr[:, H:].T)   # wrq
    reg_slab = reg_slab.at[2 * H, :F].set(params['br'])    # br

    x_tm = jnp.transpose(X, (1, 0, 2)).reshape(T * B, F)   # time-major flatten

    vmem = pl.BlockSpec(memory_space=pltpu.MemorySpace.VMEM)
    kernel = pl.pallas_call(
        functools.partial(decoder_attn_kernel, mxu_dtype=mxu_dtype),
        out_shape=jax.ShapeDtypeStruct((B, Fp), jnp.float32),
        in_specs=[vmem] * 7,
        out_specs=vmem,
    )
    out = kernel(x_tm, hidden_seq, gates_ih, gates_hh, bias_blk, wqk, reg_slab)
    return out[:, :F].reshape(-1, 1, F)                    # out.view(-1, 1, n_features)


def reference_forward(X, hidden_seq, params):
    """Pure-JAX reference (mirrors the PyTorch module, mask=None)."""
    keys = hidden_seq
    h = hidden_seq[:, -1, :]
    H = h.shape[-1]
    for t in range(X.shape[1]):
        x_t = X[:, t, :]
        gi = x_t @ params['w_ih'].T + params['b_ih']
        gh = h @ params['w_hh'].T + params['b_hh']
        i_r, i_z, i_n = gi[:, 0:H], gi[:, H:2 * H], gi[:, 2 * H:3 * H]
        h_r, h_z, h_n = gh[:, 0:H], gh[:, H:2 * H], gh[:, 2 * H:3 * H]
        r = jax.nn.sigmoid(i_r + h_r)
        z = jax.nn.sigmoid(i_z + h_z)
        n = jnp.tanh(i_n + r * h_n)
        h = (1.0 - z) * n + z * h
    query = h
    proj_q = query @ params['wq'].T + params['bq']
    proj_k = jnp.einsum('blh,gh->blg', keys, params['wk']) + params['bk']
    scores = jnp.einsum('bh,blh->bl', proj_q, proj_k) / jnp.sqrt(jnp.float32(H))
    alphas = jax.nn.softmax(scores, axis=-1)
    context = jnp.einsum('bl,blh->bh', alphas, keys)
    concat = jnp.concatenate([context, query], axis=-1)
    out = concat @ params['wr'].T + params['br']
    return out.reshape(-1, 1, X.shape[-1])


if __name__ == "__main__":
    # Small shapes consistent with the module:
    #   n_features F = 4, hidden_dim H = 32, batch B = 2,
    #   encoder length L = 8, decoder steps T = 1.
    B, T, F, H, L = 2, 1, 4, 32, 8

    key = jax.random.PRNGKey(0)
    ks = jax.random.split(key, 12)
    s = 0.1
    params = {
        # GRU weights (gate order [r, z, n], PyTorch layout)
        'w_ih': jax.random.normal(ks[0], (3 * H, F), jnp.float32) * s,
        'w_hh': jax.random.normal(ks[1], (3 * H, H), jnp.float32) * s,
        'b_ih': jax.random.normal(ks[2], (3 * H,), jnp.float32) * s,
        'b_hh': jax.random.normal(ks[3], (3 * H,), jnp.float32) * s,
        # attention linear_query / linear_key (linear_value unused: proj_values=False)
        'wq': jax.random.normal(ks[4], (H, H), jnp.float32) * s,
        'bq': jax.random.normal(ks[5], (H,), jnp.float32) * s,
        'wk': jax.random.normal(ks[6], (H, H), jnp.float32) * s,
        'bk': jax.random.normal(ks[7], (H,), jnp.float32) * s,
        # regression head: Linear(2H -> F)
        'wr': jax.random.normal(ks[8], (F, 2 * H), jnp.float32) * s,
        'br': jax.random.normal(ks[9], (F,), jnp.float32) * s,
    }

    X = jax.random.normal(ks[10], (B, T, F), jnp.float32)
    hidden_seq = jax.random.normal(ks[11], (B, L, H), jnp.float32)

    out = decoder_attn_forward(X, hidden_seq, params)
    out = jax.block_until_ready(out)

    ref = reference_forward(X, hidden_seq, params)
    # Exact softmax division restored -> tight tolerance again.
    np.testing.assert_allclose(np.asarray(out), np.asarray(ref),
                               rtol=1e-5, atol=1e-5)
    assert out.shape == (B, 1, F)
    print("KERNEL_OK")
</pallas_src>

<mosaic_0001>
module attributes {stable_mosaic.version = 11 : i64} {
  func.func @decoder_attn_kernel(%arg0: memref<2x4xf32, #tpu.memory_space<vmem>>, %arg1: memref<2x8x32xf32, #tpu.memory_space<vmem>>, %arg2: memref<4x96xf32, #tpu.memory_space<vmem>>, %arg3: memref<32x96xf32, #tpu.memory_space<vmem>>, %arg4: memref<3x96xf32, #tpu.memory_space<vmem>>, %arg5: memref<32x64xf32, #tpu.memory_space<vmem>>, %arg6: memref<65x128xf32, #tpu.memory_space<vmem>>, %arg7: memref<2x128xf32, #tpu.memory_space<vmem>>) attributes {dimension_semantics = [], scalar_prefetch = 0 : i64, scratch_operands = 0 : i64, tpu.core_type = #tpu.core_type<tc>} {
    %c0 = arith.constant 0 : index
    %c0_0 = arith.constant 0 : index
    %0 = vector.load %arg4[%c0, %c0_0] : memref<3x96xf32, #tpu.memory_space<vmem>>, vector<3x96xf32>
    %1 = vector.extract_strided_slice %0 {offsets = [0, 0], sizes = [1, 96], strides = [1, 1]} : vector<3x96xf32> to vector<1x96xf32>
    %2 = vector.extract_strided_slice %0 {offsets = [1, 0], sizes = [1, 96], strides = [1, 1]} : vector<3x96xf32> to vector<1x96xf32>
    %3 = vector.shape_cast %2 : vector<1x96xf32> to vector<1x96xf32>
    %4 = vector.broadcast %3 : vector<1x96xf32> to vector<2x96xf32>
    %5 = vector.extract_strided_slice %0 {offsets = [2, 0], sizes = [1, 32], strides = [1, 1]} : vector<3x96xf32> to vector<1x32xf32>
    %6 = vector.extract_strided_slice %0 {offsets = [2, 32], sizes = [1, 32], strides = [1, 1]} : vector<3x96xf32> to vector<1x32xf32>
    %c0_1 = arith.constant 0 : index
    %c7 = arith.constant 7 : index
    %c0_2 = arith.constant 0 : index
    %7 = vector.load %arg1[%c0_1, %c7, %c0_2] : memref<2x8x32xf32, #tpu.memory_space<vmem>>, vector<2x1x32xf32>
    %8 = vector.shape_cast %7 : vector<2x1x32xf32> to vector<2x32xf32>
    %c0_3 = arith.constant 0 : index
    %c0_4 = arith.constant 0 : index
    %9 = vector.load %arg0[%c0_3, %c0_4] : memref<2x4xf32, #tpu.memory_space<vmem>>, vector<2x4xf32>
    %c0_5 = arith.constant 0 : index
    %c0_6 = arith.constant 0 : index
    %10 = vector.load %arg2[%c0_5, %c0_6] : memref<4x96xf32, #tpu.memory_space<vmem>>, vector<4x96xf32>
    %cst = arith.constant dense<0.000000e+00> : vector<2x96xf32>
    %11 = tpu.matmul %9, %10, %cst {dimension_numbers = #tpu.dot_dimension_numbers<[1], [0], [0], [1], [0, 0, 1, 1], [], []>} : vector<2x4xf32>, vector<4x96xf32>, vector<2x96xf32> -> vector<2x96xf32>
    %12 = vector.broadcast %1 : vector<1x96xf32> to vector<2x96xf32>
    %13 = arith.addf %11, %12 : vector<2x96xf32>
    %c0_7 = arith.constant 0 : index
    %c0_8 = arith.constant 0 : index
    %14 = vector.load %arg3[%c0_7, %c0_8] : memref<32x96xf32, #tpu.memory_space<vmem>>, vector<32x96xf32>
    %cst_9 = arith.constant dense<0.000000e+00> : vector<2x96xf32>
    %15 = tpu.matmul %8, %14, %cst_9 {dimension_numbers = #tpu.dot_dimension_numbers<[1], [0], [0], [1], [0, 0, 1, 1], [], []>} : vector<2x32xf32>, vector<32x96xf32>, vector<2x96xf32> -> vector<2x96xf32>
    %16 = arith.addf %15, %4 : vector<2x96xf32>
    %17 = vector.extract_strided_slice %13 {offsets = [0, 0], sizes = [2, 32], strides = [1, 1]} : vector<2x96xf32> to vector<2x32xf32>
    %18 = vector.extract_strided_slice %16 {offsets = [0, 0], sizes = [2, 32], strides = [1, 1]} : vector<2x96xf32> to vector<2x32xf32>
    %19 = arith.addf %17, %18 : vector<2x32xf32>
    %20 = arith.negf %19 : vector<2x32xf32>
    %21 = math.exp %20 : vector<2x32xf32>
    %cst_10 = arith.constant 1.000000e+00 : f32
    %22 = vector.broadcast %cst_10 : f32 to vector<2x32xf32>
    %23 = arith.addf %22, %21 : vector<2x32xf32>
    %24 = arith.divf %22, %23 : vector<2x32xf32>
    %25 = vector.extract_strided_slice %13 {offsets = [0, 32], sizes = [2, 32], strides = [1, 1]} : vector<2x96xf32> to vector<2x32xf32>
    %26 = vector.extract_strided_slice %16 {offsets = [0, 32], sizes = [2, 32], strides = [1, 1]} : vector<2x96xf32> to vector<2x32xf32>
    %27 = arith.addf %25, %26 : vector<2x32xf32>
    %28 = arith.negf %27 : vector<2x32xf32>
    %29 = math.exp %28 : vector<2x32xf32>
    %cst_11 = arith.constant 1.000000e+00 : f32
    %30 = vector.broadcast %cst_11 : f32 to vector<2x32xf32>
    %31 = arith.addf %30, %29 : vector<2x32xf32>
    %32 = arith.divf %30, %31 : vector<2x32xf32>
    %33 = vector.extract_strided_slice %13 {offsets = [0, 64], sizes = [2, 32], strides = [1, 1]} : vector<2x96xf32> to vector<2x32xf32>
    %34 = vector.extract_strided_slice %16 {offsets = [0, 64], sizes = [2, 32], strides = [1, 1]} : vector<2x96xf32> to vector<2x32xf32>
    %35 = arith.mulf %24, %34 : vector<2x32xf32>
    %36 = arith.addf %33, %35 : vector<2x32xf32>
    %37 = math.tanh %36 : vector<2x32xf32>
    %cst_12 = arith.constant 1.000000e+00 : f32
    %38 = vector.broadcast %cst_12 : f32 to vector<2x32xf32>
    %39 = arith.subf %38, %32 : vector<2x32xf32>
    %40 = arith.mulf %39, %37 : vector<2x32xf32>
    %41 = arith.mulf %32, %8 : vector<2x32xf32>
    %42 = arith.addf %40, %41 : vector<2x32xf32>
    %c0_13 = arith.constant 0 : index
    %c0_14 = arith.constant 0 : index
    %43 = vector.load %arg5[%c0_13, %c0_14] : memref<32x64xf32, #tpu.memory_space<vmem>>, vector<32x64xf32>
    %44 = vector.extract_strided_slice %43 {offsets = [0, 0], sizes = [32, 32], strides = [1, 1]} : vector<32x64xf32> to vector<32x32xf32>
    %cst_15 = arith.constant dense<0.000000e+00> : vector<2x32xf32>
    %45 = tpu.matmul %42, %44, %cst_15 {dimension_numbers = #tpu.dot_dimension_numbers<[1], [0], [0], [1], [0, 0, 1, 1], [], []>} : vector<2x32xf32>, vector<32x32xf32>, vector<2x32xf32> -> vector<2x32xf32>
    %46 = vector.broadcast %5 : vector<1x32xf32> to vector<2x32xf32>
    %47 = arith.addf %45, %46 : vector<2x32xf32>
    %c0_16 = arith.constant 0 : index
    %c0_17 = arith.constant 0 : index
    %c0_18 = arith.constant 0 : index
    %48 = vector.load %arg1[%c0_16, %c0_17, %c0_18] : memref<2x8x32xf32, #tpu.memory_space<vmem>>, vector<2x8x32xf32>
    %49 = vector.shape_cast %48 : vector<2x8x32xf32> to vector<16x32xf32>
    %50 = vector.extract_strided_slice %43 {offsets = [0, 32], sizes = [32, 32], strides = [1, 1]} : vector<32x64xf32> to vector<32x32xf32>
    %cst_19 = arith.constant dense<0.000000e+00> : vector<16x32xf32>
    %51 = tpu.matmul %49, %50, %cst_19 {dimension_numbers = #tpu.dot_dimension_numbers<[1], [0], [0], [1], [0, 0, 1, 1], [], []>} : vector<16x32xf32>, vector<32x32xf32>, vector<16x32xf32> -> vector<16x32xf32>
    %52 = vector.broadcast %6 : vector<1x32xf32> to vector<16x32xf32>
    %53 = arith.addf %51, %52 : vector<16x32xf32>
    %54 = vector.shape_cast %53 : vector<16x32xf32> to vector<2x8x32xf32>
    %55 = vector.shape_cast %47 : vector<2x32xf32> to vector<2x1x32xf32>
    %56 = vector.broadcast %55 : vector<2x1x32xf32> to vector<2x8x32xf32>
    %57 = arith.mulf %56, %54 : vector<2x8x32xf32>
    %cst_20 = arith.constant dense<0.000000e+00> : vector<2x8xf32>
    %58 = vector.multi_reduction <add>, %57, %cst_20 [2] : vector<2x8x32xf32> to vector<2x8xf32>
    %cst_21 = arith.constant dense<0xFF800000> : vector<2xf32>
    %59 = vector.multi_reduction <maximumf>, %58, %cst_21 [1] : vector<2x8xf32> to vector<2xf32>
    %60 = vector.shape_cast %59 : vector<2xf32> to vector<2x1xf32>
    %61 = vector.broadcast %60 : vector<2x1xf32> to vector<2x8xf32>
    %62 = arith.subf %58, %61 : vector<2x8xf32>
    %63 = math.exp %62 : vector<2x8xf32>
    %cst_22 = arith.constant dense<0.000000e+00> : vector<2xf32>
    %64 = vector.multi_reduction <add>, %63, %cst_22 [1] : vector<2x8xf32> to vector<2xf32>
    %65 = vector.shape_cast %64 : vector<2xf32> to vector<2x1xf32>
    %66 = vector.broadcast %65 : vector<2x1xf32> to vector<2x8xf32>
    %67 = arith.divf %63, %66 : vector<2x8xf32>
    %68 = vector.shape_cast %67 : vector<2x8xf32> to vector<2x8x1xf32>
    %69 = vector.broadcast %68 : vector<2x8x1xf32> to vector<2x8x32xf32>
    %70 = arith.mulf %69, %48 : vector<2x8x32xf32>
    %cst_23 = arith.constant dense<0.000000e+00> : vector<2x32xf32>
    %71 = vector.multi_reduction <add>, %70, %cst_23 [1] : vector<2x8x32xf32> to vector<2x32xf32>
    %c0_24 = arith.constant 0 : index
    %c0_25 = arith.constant 0 : index
    %72 = vector.load %arg6[%c0_24, %c0_25] : memref<65x128xf32, #tpu.memory_space<vmem>>, vector<32x128xf32>
    %c32 = arith.constant 32 : index
    %c0_26 = arith.constant 0 : index
    %73 = vector.load %arg6[%c32, %c0_26] : memref<65x128xf32, #tpu.memory_space<vmem>>, vector<32x128xf32>
    %c64 = arith.constant 64 : index
    %c0_27 = arith.constant 0 : index
    %74 = vector.load %arg6[%c64, %c0_27] : memref<65x128xf32, #tpu.memory_space<vmem>>, vector<1x128xf32>
    %cst_28 = arith.constant dense<0.000000e+00> : vector<2x128xf32>
    %75 = tpu.matmul %71, %72, %cst_28 {dimension_numbers = #tpu.dot_dimension_numbers<[1], [0], [0], [1], [0, 0, 1, 1], [], []>} : vector<2x32xf32>, vector<32x128xf32>, vector<2x128xf32> -> vector<2x128xf32>
    %cst_29 = arith.constant dense<0.000000e+00> : vector<2x128xf32>
    %76 = tpu.matmul %42, %73, %cst_29 {dimension_numbers = #tpu.dot_dimension_numbers<[1], [0], [0], [1], [0, 0, 1, 1], [], []>} : vector<2x32xf32>, vector<32x128xf32>, vector<2x128xf32> -> vector<2x128xf32>
    %77 = arith.addf %75, %76 : vector<2x128xf32>
    %78 = vector.broadcast %74 : vector<1x128xf32> to vector<2x128xf32>
    %79 = arith.addf %77, %78 : vector<2x128xf32>
    %c0_30 = arith.constant 0 : index
    %c0_31 = arith.constant 0 : index
    %80 = vector.load %arg7[%c0_30, %c0_31] : memref<2x128xf32, #tpu.memory_space<vmem>>, vector<2x128xf32>
    tpu.vector_store %arg7[%c0_30, %c0_31], %79 {strides = array<i32>} : memref<2x128xf32, #tpu.memory_space<vmem>>, vector<2x128xf32>,
    return
  }
}

</mosaic_0001>

<bundles_post_ra>
// kernel: tpu_custom_call.1
= control target key start
LH: loop header
LB: loop body
LE: loop exit
PB: predicated region body
PF: predicated region fallthrough
CT: control target
= control target key end

     0   :  { %12 = vsyncpa [#allocation3], 0  ;;  %s1331_s0 = inlined_call_operand.hbm [shape: f32[2,4], index: 0, kind: input, shape index: {}]   ;;  %s1332_s1 = inlined_call_operand.hbm [shape: f32[2,8,32], index: 1, kind: input, shape index: {}]   ;;  %s1333_s2 = inlined_call_operand.vmem [shape: f32[4,96], index: 2, kind: input, shape index: {}]   ;;  %s1334_s3 = inlined_call_operand.hbm [shape: f32[32,96], index: 3, kind: input, shape index: {}]   ;;  %s1335_s4 = inlined_call_operand.vmem [shape: f32[3,96], index: 4, kind: input, shape index: {}]   ;;  %s1336_s5 = inlined_call_operand.hbm [shape: f32[32,64], index: 5, kind: input, shape index: {}]   ;;  %s1337_s6 = inlined_call_operand.hbm [shape: f32[65,128], index: 6, kind: input, shape index: {}]   ;;  %s1338_s7 = inlined_call_operand.hbm [shape: f32[2,128], index: 7, kind: output, shape index: {}]  }
   0x1   :  { %13 = vsyncpa [#allocation6], 0 }
   0x2   :  { %14 = vsyncpa [#allocation9], 0 }
   0x3   :  { %15 = vsyncpa [#allocation4], 0  ;;  %s1108_s24 = smov [#allocation5]   ;;  %s968_s28 = scalar_lea.hbm %s1332_s1, 256 }
   0x4   :  { %s31_s25 = sshll.u32 %s1108_s24, 4  ;;  %p969_p0 = scmp.ne.s32.totalorder %s1332_s1, %s968_s28  ;;  %s32_s25 = int_to_ptr.vmem [resolvable:$true] %s31_s25 }
   0x5   :  { %p972_p1 = scmp.lt.u32.totalorder %s968_s28, %s1332_s1 }
   0x7   :  { %p974_p2 = pnand %p972_p1, %p969_p0 }
   0x9   :  { %977 = shalt.err (!%p974_p2)
}
   0xa   :  { %s978_s10 = scalar_lea.vmem %s32_s25, 256  ;;  %p983_p4 = scmp.lt.s32.totalorder %s32_s25, %s32_s25 }
   0xb   :  { %p979_p3 = scmp.ne.s32.totalorder %s32_s25, %s978_s10  ;;  %p984_p5 = scmp.lt.s32.totalorder %s978_s10, %s978_s10 }
   0xd   :  { %p985_p6 = por %p984_p5, %p983_p4 }
   0xf   :  { %p986_p7 = pnand %p985_p6, %p979_p3 }
  0x11   :  { %989 = shalt.err (!%p986_p7)
}
  0x12   :  { %s1109_s11 = smov 128   ;;  %s1110_s12 = smov 8  }
  0x13   :  { %37 = dma.hbm_to_vmem [thread:$0]  %s1332_s1, 256, %s32_s25, [#allocation6], %s1109_s11, %s1109_s11, %s1110_s12  }
  0x14   :  { %s1111_s15 = smov [#allocation8]   ;;  %s1112_s17 = smov [#allocation2]  }
  0x15   :  { %s59_s16 = sshll.u32 %s1111_s15, 4  ;;  %s22_s18 = sshll.u32 %s1112_s17, 4  ;;  %s60_s16 = int_to_ptr.vmem [resolvable:$true] %s59_s16  ;;  %s23_s18 = int_to_ptr.vmem [resolvable:$true] %s22_s18 }
  0x16   :  { %s990_s21 = scalar_lea.hbm %s1336_s5, 512 }
  0x17   :  { %p991_p8 = scmp.ne.s32.totalorder %s1336_s5, %s990_s21  ;;  %p994_p9 = scmp.lt.u32.totalorder %s990_s21, %s1336_s5 }
  0x19   :  { %p996_p10 = pnand %p994_p9, %p991_p8 }
  0x1b   :  { %999 = shalt.err (!%p996_p10)
}
  0x1c   :  { %s1000_s1 = scalar_lea.vmem %s60_s16, 512  ;;  %p1005_p12 = scmp.lt.s32.totalorder %s60_s16, %s60_s16 }
  0x1d   :  { %p1001_p11 = scmp.ne.s32.totalorder %s60_s16, %s1000_s1  ;;  %p1006_p13 = scmp.lt.s32.totalorder %s1000_s1, %s1000_s1 }
  0x1f   :  { %p1007_p0 = por %p1006_p13, %p1005_p12 }
  0x21   :  { %p1008_p1 = pnand %p1007_p0, %p1001_p11 }
  0x23   :  { %1011 = shalt.err (!%p1008_p1)
}
  0x24   :  { %65 = dma.hbm_to_vmem [thread:$0]  %s1336_s5, 512, %s60_s16, [#allocation9], %s1109_s11, %s1109_s11, %s1110_s12  }
  0x25   :  { %s1012_s30 = scalar_lea.hbm %s1331_s0, 32 }
  0x26   :  { %p1013_p2 = scmp.ne.s32.totalorder %s1331_s0, %s1012_s30  ;;  %p1016_p3 = scmp.lt.u32.totalorder %s1012_s30, %s1331_s0 }
  0x28   :  { %p1018_p4 = pnand %p1016_p3, %p1013_p2 }
  0x2a   :  { %1021 = shalt.err (!%p1018_p4)
}
  0x2b   :  { %s1022_s14 = scalar_lea.vmem %s23_s18, 32  ;;  %p1027_p6 = scmp.lt.s32.totalorder %s23_s18, %s23_s18 }
  0x2c   :  { %p1023_p5 = scmp.ne.s32.totalorder %s23_s18, %s1022_s14  ;;  %p1028_p7 = scmp.lt.s32.totalorder %s1022_s14, %s1022_s14 }
  0x2e   :  { %p1029_p8 = por %p1028_p7, %p1027_p6 }
  0x30   :  { %p1030_p9 = pnand %p1029_p8, %p1023_p5 }
  0x32   :  { %1033 = shalt.err (!%p1030_p9)
}
  0x33   :  { %25 = dma.hbm_to_vmem [thread:$0]  %s1331_s0, 32, %s23_s18, [#allocation3]  }
  0x34   :  { %s1113_s16 = smov [#allocation7]   ;;  %s1114_s19 = smov [#allocation10]  }
  0x35   :  { %s45_s17 = sshll.u32 %s1113_s16, 4  ;;  %s71_s20 = sshll.u32 %s1114_s19, 4  ;;  %s46_s17 = int_to_ptr.vmem [resolvable:$true] %s45_s17  ;;  %s72_s20 = int_to_ptr.vmem [resolvable:$true] %s71_s20 }
  0x36   :  { %s1034_s23 = scalar_lea.hbm %s1334_s3, 512 }
  0x37   :  { %p1035_p10 = scmp.ne.s32.totalorder %s1334_s3, %s1034_s23  ;;  %p1038_p11 = scmp.lt.u32.totalorder %s1034_s23, %s1334_s3 }
  0x39   :  { %p1040_p12 = pnand %p1038_p11, %p1035_p10 }
  0x3b   :  { %1043 = shalt.err (!%p1040_p12)
}
  0x3c   :  { %s1044_s0 = scalar_lea.vmem %s46_s17, 512  ;;  %p1049_p0 = scmp.lt.s32.totalorder %s46_s17, %s46_s17 }
  0x3d   :  { %p1045_p13 = scmp.ne.s32.totalorder %s46_s17, %s1044_s0  ;;  %p1050_p1 = scmp.lt.s32.totalorder %s1044_s0, %s1044_s0 }
  0x3f   :  { %p1051_p2 = por %p1050_p1, %p1049_p0 }
  0x41   :  { %p1052_p3 = pnand %p1051_p2, %p1045_p13 }
  0x43   :  { %1055 = shalt.err (!%p1052_p3)
}
  0x44   :  { %51 = dma.hbm_to_vmem [thread:$0]  %s1334_s3, 512, %s46_s17, [#allocation6], %s1109_s11, %s1109_s11, %s1110_s12  }
  0x45   :  { %s1056_s30 = scalar_lea.hbm %s1337_s6, 1152 }
  0x46   :  { %p1057_p4 = scmp.ne.s32.totalorder %s1337_s6, %s1056_s30  ;;  %p1060_p5 = scmp.lt.u32.totalorder %s1056_s30, %s1337_s6 }
  0x48   :  { %p1062_p6 = pnand %p1060_p5, %p1057_p4 }
  0x4a   :  { %1065 = shalt.err (!%p1062_p6)
}
  0x4b   :  { %s1066_s14 = scalar_lea.vmem %s72_s20, 1152  ;;  %p1071_p8 = scmp.lt.s32.totalorder %s72_s20, %s72_s20 }
  0x4c   :  { %p1067_p7 = scmp.ne.s32.totalorder %s72_s20, %s1066_s14  ;;  %p1072_p9 = scmp.lt.s32.totalorder %s1066_s14, %s1066_s14 }
  0x4e   :  { %p1073_p10 = por %p1072_p9, %p1071_p8 }
  0x50   :  { %p1074_p11 = pnand %p1073_p10, %p1067_p7 }
  0x52   :  { %1077 = shalt.err (!%p1074_p11)
}
  0x53   :  { %77 = dma.hbm_to_vmem [thread:$0]  %s1337_s6, 1152, %s72_s20, [#allocation9], %s1109_s11, %s1109_s11, %s1110_s12  }
  0x54   :  { %1100 = dma.done.wait [#allocation3], 32  }
  0x55   :  { %1101 = vsyncadd [#allocation3], 4294967264 }
  0x56   :  { %1102 = dma.done.wait [#allocation6], 768  }
  0x57   :  { %1103 = vsyncadd [#allocation6], 4294966528 }
  0x58   :  { %1104 = dma.done.wait [#allocation9], 1664  }
  0x59   :  { %1105 = vsyncadd [#allocation9], 4294965632  ;;  %v1115_v0 = vmov 0.0|0.0   ;;  %v1116_v1 = vmov 0.0   ;;  %vm1117_vm0 = vmmov 0   ;;  %vm110_vm1 = vcmask 1043456  }
  0x5a   :  { %894 = vmatprep.subr.bf16.mxu1 %v1115_v0  ;;  %834 = vmatprep.subr.mxu0 %v1116_v1  ;;  %v184_v2 = vld [vmem:[#allocation7] sm:$0xff]  ;;  %v185_v3 = vld [vmem:[#allocation7 + $0x8] sm:$0xff]  ;;  %v186_v4 = vld [vmem:[#allocation7 + $0x10] sm:$0xff]  ;;  %vm106_vm2 = vcmask 31744   ;;  %vm191_vm3 = vcmask 1041409   ;;  %vm193_vm4 = vcmask 261120   ;;  %v94_v14 = vlaneseq }
  0x5b   :  { %836 = vmatprep.mubr.msk.f32.mxu0 %vm1117_vm0, %v1116_v1  ;;  %847 = vmatprep.mubr.msk.f32.mxu1 %vm1117_vm0, %v1116_v1  ;;  %v895_v5 = vpack.c.bf16 %v185_v3, %v184_v2  ;;  %v187_v6 = vld [vmem:[#allocation7 + $0x18] sm:$0xff]  ;;  %v100_v8 = vld [vmem:[#allocation2] sm:$0x3]  ;;  %v98_v12 = vld [vmem:[#allocation5 + $0x7] sm:$0x1]  ;;  %s1118_s15 = smov 64  }
  0x5c   :  { %v101_v7 = vld [vmem:[%s1333_s2] sm:$0xf]  ;;  %v898_v10 = vpack.c.bf16 %v187_v6, %v186_v4  ;;  %v1252_v15 = vshrl.u32 %v94_v14, 7  ;;  %v296_v35 = vld [vmem:[#allocation8 + $0x8] sm:$0xff]  ;;  %v297_v40 = vld [vmem:[#allocation8 + $0x10] sm:$0xff]  ;;  %s1120_s16 = smov 32  }
  0x5d   :  { %835 = vmatpush3.msk.msra.mxu0 %vm110_vm1, %v101_v7  ;;  %v99_v9 = vld [vmem:[#allocation5 + $0xf] sm:$0x1]  ;;  %896 = vmatpush3.bf16.msra.mxu1 %v895_v5  ;;  %v295_v34 = vld [vmem:[#allocation8] sm:$0xff]  ;;  %v1274_v53 = vld [vmem:[#allocation5] sm:$0xff]  ;;  %vm536_vm5 = vcmask 58368   ;;  %s1123_s17 = smov [#allocation11]  }
  0x5e   :  { %837 = vmatmul.mubr.msk.f32.vlgmr.msra.gmra.mrb[0].mxu0 %vm106_vm2, %v100_v8  ;;  %v190_v11 = vrot.slane %v99_v9, 7  ;;  %897 = vmatprep.subr.bf16.mxu1 %v1115_v0  ;;  %v1255_v17 = vsub.s32 1, %v1252_v15  ;;  %v1260_v18 = vld [vmem:[%s1335_s4] sm:$0x7]  ;;  %v1265_v24 = vsub.s32 0, %v1252_v15  ;;  %v942_v37 = vpack.i.bf16 %v296_v35, %v295_v34  ;;  %s1119_s4 = smov 96  }
  0x5f   :  { %900 = vmatprep.subr.bf16.mxu0 %v1115_v0  ;;  %858 = vmatprep.mubr.msk.f32.mxu0 %vm1117_vm0, %v1116_v1  ;;  %v901_v39 = vpack.c.bf16 %v296_v35, %v295_v34  ;;  %v298_v41 = vld [vmem:[#allocation8 + $0x18] sm:$0xff]  ;;  %v301_v60 = vsub.s32 2, %v1252_v15  ;;  %v623_v63 = vld [vmem:[#allocation10 + $0x20] sm:$0xff]  ;;  %v624_v2 = vld [vmem:[#allocation10 + $0x28] sm:$0xff]  ;;  %v525_v35 = vand.u32 127, %v94_v14  ;;  %s785_s19 = sshll.u32 %s1123_s17, 4  ;;  %s786_s19 = int_to_ptr.vmem [resolvable:$true] %s785_s19 }
  0x60   :  { %v192_v13 = vsel %vm191_vm3, %v190_v11, %v98_v12  ;;  %v97_v20 = vrot.slane %v1260_v18, %v1255_v17  ;;  %v105_v25 = vrot.slane %v1260_v18, %v1265_v24  ;;  %v947_v42 = vpack.i.bf16 %v298_v41, %v297_v40  ;;  %v1279_v55 = vld [vmem:[#allocation5 + $0x8] sm:$0xff]  ;;  %v625_v4 = vld [vmem:[#allocation10 + $0x30] sm:$0xff]  ;;  %s1078_s20 = scalar_lea.vmem %s786_s19, 32  ;;  %p1083_p13 = scmp.lt.s32.totalorder %s786_s19, %s786_s19 }
  0x61   :  { %899 = vmatpush3.bf16.msra.mxu1 %v898_v10  ;;  %902 = vmatpush3.bf16.msra.mxu0 %v901_v39  ;;  %v904_v43 = vpack.c.bf16 %v298_v41, %v297_v40  ;;  %v302_v62 = vrot.slane %v1260_v18, %v301_v60  ;;  %v915_v3 = vpack.c.bf16 %v624_v2, %v623_v63  ;;  %v626_v5 = vld [vmem:[#allocation10 + $0x38] sm:$0xff]  ;;  %v1121_v10 = vmov 1966171168   ;;  %p1079_p12 = scmp.ne.s32.totalorder %s786_s19, %s1078_s20  ;;  %p1084_p0 = scmp.lt.s32.totalorder %s1078_s20, %s1078_s20 }
  0x62   :  { %903 = vmatprep.subr.bf16.mxu0 %v1115_v0  ;;  %v918_v7 = vpack.c.bf16 %v626_v5, %v625_v4  ;;  %v483_v11 = vunpack.c.l.s4 %v1121_v10  ;;  %v619_v4 = vld [vmem:[#allocation10] sm:$0xff]  ;;  %v620_v5 = vld [vmem:[#allocation10 + $0x8] sm:$0xff] }
  0x63   :  { %p1085_p1 = por %p1084_p0, %p1083_p13 }
  0x64   :  { %848 = vmatmul.mubr.msk.f32.vlgmr.msra.gmra.mrb[0].mxu1 %vm193_vm4, %v192_v13  ;;  %v484_v12 = vunpack.c.0.s8 %v483_v11 }
  0x65   :  { %905 = vmatpush3.bf16.msra.mxu0 %v904_v43  ;;  %869 = vmatprep.mubr.msk.f32.mxu1 %vm193_vm4, %v1274_v53  ;;  %v1122_v43 = vmov 0   ;;  %p1086_p2 = pnand %p1085_p1, %p1079_p12 }
  0x66   :  { %914 = vmatprep.subr.bf16.mxu0 %v1115_v0  ;;  %953 = vset.pattern.permute.xlu1 %v1122_v43 }
  0x67   :  { %952 = vset.pattern.permute.xlu0 %v1122_v43 }
 0x131   :  { %v180_v16 = vpop.f32.mrb[0].mxu0 }
 0x132   :  { %v838_v19 = vpop.f32.mrb[1].mxu0  ;;  %v181_v26 = vadd.f32 %v180_v16, %v105_v25 }
 0x137   :  { %v262_v21 = vpop.f32.mrb[0].mxu1 }
 0x138   :  { %v263_v22 = vadd.f32 %v262_v21, %v97_v20  ;;  %v849_v23 = vpop.f32.mrb[1].mxu1 }
 0x13a   :  { %274 = vrot.lane.b32.xlu0 %v263_v22, %s1118_s15  ;;  %v266_v27 = vadd.f32 %v263_v22, %v181_v26 }
 0x13c   :  { %v799_v28 = vmul.f32 -1.442695, %v266_v27 }
 0x13e   :  { %954 = vpow2.f32 %v799_v28 }
 0x148   :  { %v955_v29 = vpop.eup %954 }
 0x149   :  { %v270_v30 = vadd.f32 1.0, %v955_v29 }
 0x14b   :  { %956 = vrcp.f32 %v270_v30 }
 0x155   :  { %v957_v31 = vpop.eup %956 }
 0x156   :  { %v284_v56 = vsub.f32 1.0, %v957_v31 }
 0x1ac   :  { %v275_v32 = vpop.permute.xlu0 %274 }
 0x1ad   :  { %v277_v33 = vmul.f32 %v957_v31, %v275_v32 }
 0x1af   :  { %279 = vrot.lane.b32.xlu0 %v277_v33, %s1118_s15 }
 0x1b3   :  { %943 = vrot.lane.b32.xlu0 %v942_v37, %s1119_s4 }
 0x1b7   :  { %948 = vrot.lane.b32.xlu0 %v947_v42, %s1119_s4 }
 0x221   :  { %v280_v36 = vpop.permute.xlu0 %279 }
 0x222   :  { %v282_v38 = vadd.f32 %v280_v36, %v181_v26  ;;  %v528_v36 = vsub.s32 %v525_v35, %v1252_v15 }
 0x224   :  { %958 = vtanh.f32 %v282_v38 }
 0x225   :  { %v944_v45 = vpop.permute.xlu0 %943 }
 0x226   :  { %v946_v46 = vunpack.i.h.bf16 %v944_v45  ;;  %v945_v47 = vunpack.i.l.bf16 %v944_v45 }
 0x228   :  { %v906_v48 = vpack.c.bf16 %v946_v46, %v945_v47 }
 0x229   :  { %v949_v49 = vpop.permute.xlu0 %948 }
 0x22a   :  { %v951_v50 = vunpack.i.h.bf16 %v949_v49  ;;  %v950_v51 = vunpack.i.l.bf16 %v949_v49  ;;  %907 = vmatprep.subr.bf16.mxu1 %v906_v48 }
 0x22b   :  { %909 = vmatpush3.bf16.msra.mxu1 %v906_v48 }
 0x22c   :  { %v910_v52 = vpack.c.bf16 %v951_v50, %v950_v51 }
 0x22e   :  { %v959_v44 = vpop.eup %958  ;;  %911 = vmatprep.subr.bf16.mxu1 %v910_v52 }
 0x22f   :  { %286 = vrot.lane.b32.xlu1 %v959_v44, %s1119_s4  ;;  %913 = vmatpush3.bf16.msra.mxu1 %v910_v52 }
 0x230   :  { %920 = vmatprep.subr.bf16.mxu1 %v1115_v0 }
 0x232   :  { %870 = vmatmul.mubr.msk.f32.vlgmr.msra.gmra.mrb[2].mxu1 %vm193_vm4, %v1279_v55 }
 0x233   :  { %290 = vrot.lane.b32.xlu1 %v192_v13, %s1120_s16  ;;  %891 = vmatprep.mubr.msk.f32.mxu1 %vm1117_vm0, %v1116_v1  ;;  %v487_v13 = vsub.s32 %v484_v12, %v1252_v15 }
 0x2a1   :  { %v287_v54 = vpop.permute.xlu1 %286 }
 0x2a2   :  { %v289_v58 = vmul.f32 %v287_v54, %v284_v56 }
 0x2a5   :  { %v291_v57 = vpop.permute.xlu1 %290 }
 0x2a6   :  { %v293_v59 = vmul.f32 %v957_v31, %v291_v57 }
 0x2a8   :  { %v294_v61 = vadd.f32 %v293_v59, %v289_v58 }
 0x2aa   :  { %304 = vrot.lane.b32.xlu1 %v294_v61, %s1119_s4 }
 0x2ae   :  { %397 = vrot.lane.b32.xlu1 %v302_v62, %s1119_s4 }
 0x305   :  { %v871_v8 = vpop.f32.mrb[2].mxu1 }
 0x306   :  { %v472_v9 = vpop.f32.mrb[3].mxu1 }
 0x31c   :  { %v305_v6 = vpop.permute.xlu1 %304 }
 0x31d   :  { %859 = vmatmul.mubr.msk.f32.vlgmr.msra.gmra.mrb[2].mxu0 %vm193_vm4, %v305_v6 }
 0x31e   :  { %916 = vmatpush3.bf16.msra.mxu0 %v915_v3  ;;  %880 = vmatprep.mubr.msk.f32.mxu0 %vm1117_vm0, %v1116_v1 }
 0x31f   :  { %917 = vmatprep.subr.bf16.mxu0 %v1115_v0 }
 0x320   :  { %v398_v20 = vpop.permute.xlu1 %397 }
 0x321   :  { %v473_v1 = vadd.f32 %v472_v9, %v398_v20  ;;  %v478_v25 = vadd.f32 %v871_v8, %v398_v20  ;;  %v622_v8 = vld [vmem:[#allocation10 + $0x18] sm:$0xff] }
 0x322   :  { %919 = vmatpush3.bf16.msra.mxu0 %v918_v7  ;;  %v621_v7 = vld [vmem:[#allocation10 + $0x10] sm:$0xff] }
 0x323   :  { %v924_v9 = vpack.c.bf16 %v622_v8, %v621_v7 }
 0x325   :  { %881 = vmatmul.mubr.msk.f32.vlgmr.msra.gmra.mrb[4].mxu0 %vm193_vm4, %v305_v6  ;;  %v921_v6 = vpack.c.bf16 %v620_v5, %v619_v4 }
 0x327   :  { %922 = vmatpush3.bf16.msra.mxu1 %v921_v6 }
 0x328   :  { %923 = vmatprep.subr.bf16.mxu1 %v1115_v0 }
 0x32b   :  { %925 = vmatpush3.bf16.msra.mxu1 %v924_v9 }
 0x3f0   :  { %v374_v16 = vpop.f32.mrb[2].mxu0 }
 0x3f1   :  { %v375_v18 = vadd.f32 %v374_v16, %v302_v62  ;;  %v860_v19 = vpop.f32.mrb[3].mxu0 }
 0x3f3   :  { %v488_v21 = vrot.slane %v375_v18, %v487_v13 }
 0x3f5   :  { %v489_v22 = vcombine.high %v488_v21, %v488_v21  ;;  %v496_v23 = vrot.slane %v488_v21, %v487_v13 }
 0x3f7   :  { %v507_v26 = vrot.slane %v496_v23, %v1265_v24  ;;  %v503_v27 = vrot.slane %v489_v22, %v487_v13 }
 0x3f8   :  { %v1296_v28 = vpop.f32.mrb[4].mxu0 }
 0x3f9   :  { %v882_v29 = vpop.f32.mrb[5].mxu0  ;;  %v514_v30 = vmul.f32 %v507_v26, %v473_v1  ;;  %v511_v31 = vrot.slane %v503_v27, %v1265_v24 }
 0x3fa   :  { %v805_v29 = vld [vmem:[#allocation10 + $0x40] ss:$0 sm:$0xff] }
 0x3fb   :  { %v516_v32 = vsel %vm193_vm4, %v514_v30, 0.0  ;;  %v515_v33 = vmul.f32 %v511_v31, %v478_v25 }
 0x3fc   :  { %517 = vadd.xlane.f32.xlu0 %v516_v32 }
 0x3fd   :  { %v519_v34 = vsel %vm193_vm4, %v515_v33, 0.0 }
 0x3fe   :  { %520 = vadd.xlane.f32.xlu1 %v519_v34 }
 0x489   :  { %v518_v37 = vpop.xlane.xlu0 %517 }
 0x48a   :  { %v529_v39 = vrot.slane %v518_v37, %v528_v36 }
 0x48b   :  { %v521_v38 = vpop.xlane.xlu1 %520 }
 0x48c   :  { %v533_v40 = vrot.slane %v521_v38, %v528_v36 }
 0x48e   :  { %v534_v41 = vsel %vm191_vm3, %v533_v40, %v529_v39 }
 0x48f   :  { %v537_v42 = vsel %vm536_vm5, %v534_v41, -inf }
 0x490   :  { %538 = vmax.xlane.f32.xlu0 %v537_v42 }
 0x51d   :  { %v539_v44 = vpop.xlane.xlu0 %538 }
 0x51e   :  { %v544_v45 = vrot.slane %v539_v44, %v1265_v24  ;;  %v548_v14 = vrot.slane %v539_v44, %v1255_v17 }
 0x520   :  { %v551_v46 = vsub.f32 %v518_v37, %v544_v45  ;;  %v552_v15 = vsub.f32 %v521_v38, %v548_v14 }
 0x522   :  { %v553_v47 = vmul.f32 1.442695, %v551_v46  ;;  %v555_v48 = vmul.f32 1.442695, %v552_v15 }
 0x524   :  { %960 = vpow2.f32 %v553_v47 }
 0x525   :  { %962 = vpow2.f32 %v555_v48 }
 0x52e   :  { %v961_v49 = vpop.eup %960 }
 0x52f   :  { %v963_v50 = vpop.eup %962  ;;  %560 = vperm.xlu0 %952, %v961_v49  }
 0x530   :  { %563 = vperm.xlu1 %953, %v963_v50  }
 0x5ae   :  { %v561_v51 = vpop.permute.xlu0 %560 }
 0x5af   :  { %v564_v52 = vpop.permute.xlu1 %563  ;;  %v568_v54 = vrot.slane %v561_v51, %v528_v36 }
 0x5b0   :  { %v572_v56 = vrot.slane %v564_v52, %v528_v36 }
 0x5b2   :  { %v573_v57 = vsel %vm191_vm3, %v572_v56, %v568_v54 }
 0x5b3   :  { %v575_v58 = vsel %vm536_vm5, %v573_v57, 0.0 }
 0x5b4   :  { %576 = vadd.xlane.f32.xlu1 %v575_v58 }
 0x641   :  { %v577_v59 = vpop.xlane.xlu1 %576 }
 0x642   :  { %v582_v60 = vrot.slane %v577_v59, %v1265_v24  ;;  %v586_v61 = vrot.slane %v577_v59, %v1255_v17 }
 0x644   :  { %964 = vrcp.f32 %v582_v60 }
 0x645   :  { %966 = vrcp.f32 %v586_v61 }
 0x64e   :  { %v965_v62 = vpop.eup %964 }
 0x64f   :  { %v590_v63 = vmul.f32 %v965_v62, %v961_v49  ;;  %v967_v2 = vpop.eup %966 }
 0x650   :  { %v592_v3 = vmul.f32 %v967_v2, %v963_v50 }
 0x651   :  { %595 = vperm.xlu0 %952, %v590_v63  }
 0x655   :  { %600 = vperm.xlu0 %952, %v592_v3  }
 0x6d0   :  { %v596_v24 = vpop.permute.xlu0 %595 }
 0x6d1   :  { %v603_v17 = vmul.f32 %v596_v24, %v1274_v53 }
 0x6d3   :  { %v605_v10 = vsel %vm193_vm4, %v603_v17, 0.0 }
 0x6d4   :  { %v606_v11 = vrot.slane %v605_v10, 4  ;;  %v601_v12 = vpop.permute.xlu0 %600 }
 0x6d5   :  { %v604_v13 = vmul.f32 %v601_v12, %v1279_v55 }
 0x6d6   :  { %v607_v16 = vadd.f32 %v606_v11, %v605_v10 }
 0x6d7   :  { %v612_v18 = vsel %vm193_vm4, %v604_v13, 0.0 }
 0x6d8   :  { %v608_v19 = vrot.slane %v607_v16, 2  ;;  %v613_v20 = vrot.slane %v612_v18, 4 }
 0x6da   :  { %v609_v21 = vadd.f32 %v608_v19, %v607_v16  ;;  %v614_v0 = vadd.f32 %v613_v20, %v612_v18 }
 0x6dc   :  { %v615_v22 = vrot.slane %v614_v0, 2  ;;  %v610_v23 = vrot.slane %v609_v21, 1 }
 0x6de   :  { %v616_v1 = vadd.f32 %v615_v22, %v614_v0  ;;  %v611_v26 = vadd.f32 %v610_v23, %v609_v21 }
 0x6e0   :  { %v617_v25 = vrot.slane %v616_v1, 1 }
 0x6e2   :  { %v618_v27 = vadd.f32 %v617_v25, %v616_v1 }
 0x6e4   :  { %v700_v53 = vsel %vm191_vm3, %v618_v27, %v611_v26 }
 0x6e5   :  { %892 = vmatmul.mubr.msk.f32.vlgmr.msra.gmra.mrb[4].mxu1 %vm193_vm4, %v700_v53 }
 0x7b8   :  { %v769_v30 = vpop.f32.mrb[4].mxu1 }
 0x7b9   :  { %v770_v55 = vadd.f32 %v769_v30, %v1296_v28  ;;  %v893_v31 = vpop.f32.mrb[5].mxu1 }
 0x7bb   :  { %v777_v32 = vadd.f32 %v805_v29, %v770_v55 }
 0x7bd   :  { %778 = vst [vmem:[#allocation11] sm:$0x3] %v777_v32 }
 0x7be   :  { %1089 = shalt.err (!%p1086_p2)
}
 0x7bf   :  { %s1090_s23 = scalar_lea.hbm %s1338_s7, 32 }
 0x7c0   :  { %p1091_p3 = scmp.ne.s32.totalorder %s1338_s7, %s1090_s23  ;;  %p1094_p4 = scmp.lt.u32.totalorder %s1090_s23, %s1338_s7 }
 0x7c2   :  { %p1096_p5 = pnand %p1094_p4, %p1091_p3 }
 0x7c4   :  { %1099 = shalt.err (!%p1096_p5)
}
 0x7c5   :  { %788 = dma.vmem_to_hbm [thread:$0]  %s786_s19, 32, %s1338_s7, [#allocation4]  }
 0x7c6   :  { %1106 = dma.done.wait [#allocation4], 32  }
 0x7c7   :  { %1107 = vsyncadd [#allocation4], 4294967264 }
 0x7c8   :  { %792 = vsyncpa [#allocation3], 1 }
 0x7c9   :  { %793 = vsyncpa [#allocation6], 1 }
 0x7ca   :  { %794 = vsyncpa [#allocation9], 1 }
 0x7cb   :  { %795 = vsyncpa [#allocation4], 1 }

</bundles_post_ra>
